<compile_context>
chip_gen: v5e
topology: v5e:2x2
jax: 0.10.0
libtpu: 0.0.40
codegen_flags: <defaults>
</compile_context>

<pallas_src>
import functools

import jax
import jax.numpy as jnp
from jax.experimental import pallas as pl
from jax.experimental.pallas import tpu as pltpu

_EPS = 1e-8  # PyTorch cosine_similarity default eps


def _triplet_loss_kernel(a_ref, p_ref, n_ref, out_ref, *, total_rows, block_rows,
                         mask_rows):
    # Upcast inside the kernel: bf16 inputs halve HBM traffic, math stays f32.
    a = a_ref[...].astype(jnp.float32)
    p = p_ref[...].astype(jnp.float32)
    n = n_ref[...].astype(jnp.float32)

    if mask_rows:
        row_ids = (jax.lax.broadcasted_iota(jnp.int32, (block_rows, 1), 0)
                   + pl.program_id(0) * block_rows)
        valid = row_ids < total_rows
        # Zero padded rows so garbage / NaN in the out-of-bounds tile region
        # cannot propagate through the reductions.
        a = jnp.where(valid, a, 0.0)
        p = jnp.where(valid, p, 0.0)
        n = jnp.where(valid, n, 0.0)

    # 1 / max(||x||, eps) via rsqrt on the EUP (no sqrt + divide on the VPU).
    eps2 = jnp.float32(_EPS * _EPS)
    inv_a = jax.lax.rsqrt(jnp.maximum(jnp.sum(a * a, axis=-1, keepdims=True), eps2))
    inv_p = jax.lax.rsqrt(jnp.maximum(jnp.sum(p * p, axis=-1, keepdims=True), eps2))
    inv_n = jax.lax.rsqrt(jnp.maximum(jnp.sum(n * n, axis=-1, keepdims=True), eps2))

    dot_ap = jnp.sum(a * p, axis=-1, keepdims=True)
    dot_an = jnp.sum(a * n, axis=-1, keepdims=True)

    dist_pos = dot_ap * inv_a * inv_p   # cosine similarity anchor/positive, (TB, 1)
    dist_neg = dot_an * inv_a * inv_n   # cosine similarity anchor/negative, (TB, 1)

    losses = (1.0 - dist_pos) ** 2 + dist_neg ** 2   # (TB, 1)
    if mask_rows:
        losses = jnp.where(valid, losses, 0.0)

    # Per-block partial sum -> SMEM scalar output (no lane-sparse VMEM store).
    out_ref[0, 0] = jnp.sum(losses)


def _choose_block_rows(B, D, block_rows=None):
    if block_rows is None:
        # v7x-safe sizing: 3 inputs * 2 pipeline buffers * TB*D*4B must stay
        # well under the 32 MiB scoped-VMEM default -> ~4 MiB per tile buffer.
        per_buf_bytes = 4 * 1024 * 1024
        block_rows = per_buf_bytes // (4 * max(D, 1))
        block_rows = max(8, min(1024, block_rows))
    block_rows = max(8, (block_rows // 8) * 8)
    if block_rows >= B:
        return B  # single full-extent tile
    return block_rows


def triplet_loss(anchor, positive, negative, margin=1.0, size_average=True,
                 block_rows=None):
    """Pallas TPU implementation of TripletLoss.forward.

    anchor/positive/negative: (B, D) arrays (f32 or bf16). Returns a scalar f32.
    """
    # TODO(synk): `margin` is stored by the PyTorch module but unused in its forward.
    del margin

    B, D = anchor.shape
    tb = _choose_block_rows(B, D, block_rows)
    num_blocks = pl.cdiv(B, tb)
    needs_mask = (B % tb) != 0

    kernel = functools.partial(
        _triplet_loss_kernel,
        total_rows=B,
        block_rows=tb,
        mask_rows=needs_mask,
    )

    partials = pl.pallas_call(
        kernel,
        out_shape=jax.ShapeDtypeStruct((num_blocks, 1), jnp.float32),
        grid_spec=pltpu.PrefetchScalarGridSpec(
            num_scalar_prefetch=0,
            grid=(num_blocks,),
            in_specs=[
                pl.BlockSpec((tb, D), lambda i: (i, 0)),
                pl.BlockSpec((tb, D), lambda i: (i, 0)),
                pl.BlockSpec((tb, D), lambda i: (i, 0)),
            ],
            out_specs=pl.BlockSpec(
                (1, 1), lambda i: (i, 0), memory_space=pltpu.MemorySpace.SMEM
            ),
        ),
        compiler_params=pltpu.CompilerParams(
            # Independent partial sums -> batch axis can be split across
            # TensorCores (v7x megacore); final reduce happens in JAX.
            dimension_semantics=("parallel",),
            vmem_limit_bytes=32 * 1024 * 1024,
        ),
    )(anchor, positive, negative)

    total = jnp.sum(partials)
    if size_average:
        total = total / jnp.float32(B)   # divide by the true B, not the tile size
    return total


def _reference(anchor, positive, negative, size_average=True):
    a = anchor.astype(jnp.float32)
    p = positive.astype(jnp.float32)
    n = negative.astype(jnp.float32)

    def cos(x, y):
        nx = jnp.maximum(jnp.linalg.norm(x, axis=1), _EPS)
        ny = jnp.maximum(jnp.linalg.norm(y, axis=1), _EPS)
        return jnp.sum(x * y, axis=1) / (nx * ny)

    dp = cos(a, p)
    dn = cos(a, n)
    losses = (1.0 - dp) ** 2 + (0.0 - dn) ** 2
    return jnp.mean(losses) if size_average else jnp.sum(losses)


if __name__ == "__main__":
    key = jax.random.PRNGKey(0)

    # --- Test 1: small shape consistent with the module (single-tile path). ---
    k_a, k_p, k_n, key = jax.random.split(key, 4)
    B, D = 8, 32
    anchor = jax.random.normal(k_a, (B, D), dtype=jnp.float32)
    positive = jax.random.normal(k_p, (B, D), dtype=jnp.float32)
    negative = jax.random.normal(k_n, (B, D), dtype=jnp.float32)

    loss = triplet_loss(anchor, positive, negative, margin=1.0, size_average=True)
    loss = jax.block_until_ready(loss)
    ref = _reference(anchor, positive, negative, size_average=True)
    assert jnp.allclose(loss, ref, rtol=1e-5, atol=1e-5), (loss, ref)

    loss_sum = triplet_loss(anchor, positive, negative, margin=1.0, size_average=False)
    loss_sum = jax.block_until_ready(loss_sum)
    ref_sum = _reference(anchor, positive, negative, size_average=False)
    assert jnp.allclose(loss_sum, ref_sum, rtol=1e-5, atol=1e-5), (loss_sum, ref_sum)

    # --- Test 2: exercise the tiled + ragged-last-tile (masked) path. ---
    k_a2, k_p2, k_n2, key = jax.random.split(key, 4)
    B2, D2 = 300, 128
    anchor2 = jax.random.normal(k_a2, (B2, D2), dtype=jnp.float32)
    positive2 = jax.random.normal(k_p2, (B2, D2), dtype=jnp.float32)
    negative2 = jax.random.normal(k_n2, (B2, D2), dtype=jnp.float32)

    loss2 = triplet_loss(anchor2, positive2, negative2, margin=1.0,
                         size_average=True, block_rows=128)
    loss2 = jax.block_until_ready(loss2)
    ref2 = _reference(anchor2, positive2, negative2, size_average=True)
    assert jnp.allclose(loss2, ref2, rtol=1e-5, atol=1e-5), (loss2, ref2)

    print("KERNEL_OK")
</pallas_src>

<mosaic_0001>
module attributes {stable_mosaic.version = 11 : i64} {
  func.func @_triplet_loss_kernel(%arg0: i32, %arg1: memref<8x32xf32, #tpu.memory_space<vmem>>, %arg2: memref<8x32xf32, #tpu.memory_space<vmem>>, %arg3: memref<8x32xf32, #tpu.memory_space<vmem>>, %arg4: memref<1x1xf32, #tpu.memory_space<smem>>) attributes {dimension_semantics = [#tpu.dimension_semantics<parallel>], iteration_bounds = array<i64: 1>, scalar_prefetch = 0 : i64, scratch_operands = 0 : i64, tpu.core_type = #tpu.core_type<tc>, window_params = [{transform_indices = @transform_0, window_bounds = array<i64: 8, 32>}, {transform_indices = @transform_1, window_bounds = array<i64: 8, 32>}, {transform_indices = @transform_2, window_bounds = array<i64: 8, 32>}, {transform_indices = @transform_3, window_bounds = array<i64: 1, 1>}]} {
    %c0 = arith.constant 0 : index
    %c0_0 = arith.constant 0 : index
    %0 = vector.load %arg1[%c0, %c0_0] : memref<8x32xf32, #tpu.memory_space<vmem>>, vector<8x32xf32>
    %c0_1 = arith.constant 0 : index
    %c0_2 = arith.constant 0 : index
    %1 = vector.load %arg2[%c0_1, %c0_2] : memref<8x32xf32, #tpu.memory_space<vmem>>, vector<8x32xf32>
    %c0_3 = arith.constant 0 : index
    %c0_4 = arith.constant 0 : index
    %2 = vector.load %arg3[%c0_3, %c0_4] : memref<8x32xf32, #tpu.memory_space<vmem>>, vector<8x32xf32>
    %3 = arith.mulf %0, %0 : vector<8x32xf32>
    %cst = arith.constant dense<0.000000e+00> : vector<8xf32>
    %4 = vector.multi_reduction <add>, %3, %cst [1] : vector<8x32xf32> to vector<8xf32>
    %5 = vector.shape_cast %4 : vector<8xf32> to vector<8x1xf32>
    %cst_5 = arith.constant 1.000000e-16 : f32
    %6 = vector.broadcast %cst_5 : f32 to vector<8x1xf32>
    %7 = arith.maximumf %5, %6 : vector<8x1xf32>
    %8 = math.rsqrt %7 : vector<8x1xf32>
    %9 = arith.mulf %1, %1 : vector<8x32xf32>
    %cst_6 = arith.constant dense<0.000000e+00> : vector<8xf32>
    %10 = vector.multi_reduction <add>, %9, %cst_6 [1] : vector<8x32xf32> to vector<8xf32>
    %11 = vector.shape_cast %10 : vector<8xf32> to vector<8x1xf32>
    %cst_7 = arith.constant 1.000000e-16 : f32
    %12 = vector.broadcast %cst_7 : f32 to vector<8x1xf32>
    %13 = arith.maximumf %11, %12 : vector<8x1xf32>
    %14 = math.rsqrt %13 : vector<8x1xf32>
    %15 = arith.mulf %2, %2 : vector<8x32xf32>
    %cst_8 = arith.constant dense<0.000000e+00> : vector<8xf32>
    %16 = vector.multi_reduction <add>, %15, %cst_8 [1] : vector<8x32xf32> to vector<8xf32>
    %17 = vector.shape_cast %16 : vector<8xf32> to vector<8x1xf32>
    %cst_9 = arith.constant 1.000000e-16 : f32
    %18 = vector.broadcast %cst_9 : f32 to vector<8x1xf32>
    %19 = arith.maximumf %17, %18 : vector<8x1xf32>
    %20 = math.rsqrt %19 : vector<8x1xf32>
    %21 = arith.mulf %0, %1 : vector<8x32xf32>
    %cst_10 = arith.constant dense<0.000000e+00> : vector<8xf32>
    %22 = vector.multi_reduction <add>, %21, %cst_10 [1] : vector<8x32xf32> to vector<8xf32>
    %23 = vector.shape_cast %22 : vector<8xf32> to vector<8x1xf32>
    %24 = arith.mulf %0, %2 : vector<8x32xf32>
    %cst_11 = arith.constant dense<0.000000e+00> : vector<8xf32>
    %25 = vector.multi_reduction <add>, %24, %cst_11 [1] : vector<8x32xf32> to vector<8xf32>
    %26 = vector.shape_cast %25 : vector<8xf32> to vector<8x1xf32>
    %27 = arith.mulf %23, %8 : vector<8x1xf32>
    %28 = arith.mulf %27, %14 : vector<8x1xf32>
    %29 = arith.mulf %26, %8 : vector<8x1xf32>
    %30 = arith.mulf %29, %20 : vector<8x1xf32>
    %cst_12 = arith.constant 1.000000e+00 : f32
    %31 = vector.broadcast %cst_12 : f32 to vector<8x1xf32>
    %32 = arith.subf %31, %28 : vector<8x1xf32>
    %33 = arith.mulf %32, %32 : vector<8x1xf32>
    %34 = arith.mulf %30, %30 : vector<8x1xf32>
    %35 = arith.addf %33, %34 : vector<8x1xf32>
    %36 = vector.shape_cast %35 : vector<8x1xf32> to vector<1x8x1xf32>
    %cst_13 = arith.constant dense<0.000000e+00> : vector<1xf32>
    %37 = vector.multi_reduction <add>, %36, %cst_13 [1, 2] : vector<1x8x1xf32> to vector<1xf32>
    %38 = vector.shape_cast %37 : vector<1xf32> to vector<1x1x1xf32>
    %39 = vector.extract %38[0, 0, 0] : f32 from vector<1x1x1xf32>
    %c0_14 = arith.constant 0 : index
    %c0_15 = arith.constant 0 : index
    %40 = memref.load %arg4[%c0_14, %c0_15] : memref<1x1xf32, #tpu.memory_space<smem>>
    memref.store %39, %arg4[%c0_14, %c0_15] : memref<1x1xf32, #tpu.memory_space<smem>>
    return
  }
  func.func @transform_0(%arg0: i32) -> (i32, i32) {
    %c0_i32 = arith.constant 0 : i32
    %c0_i32_0 = arith.constant 0 : i32
    return %arg0, %c0_i32 : i32, i32
  }
  func.func @transform_1(%arg0: i32) -> (i32, i32) {
    %c0_i32 = arith.constant 0 : i32
    %c0_i32_0 = arith.constant 0 : i32
    return %arg0, %c0_i32 : i32, i32
  }
  func.func @transform_2(%arg0: i32) -> (i32, i32) {
    %c0_i32 = arith.constant 0 : i32
    %c0_i32_0 = arith.constant 0 : i32
    return %arg0, %c0_i32 : i32, i32
  }
  func.func @transform_3(%arg0: i32) -> (i32, i32) {
    %c0_i32 = arith.constant 0 : i32
    %c0_i32_0 = arith.constant 0 : i32
    return %arg0, %c0_i32 : i32, i32
  }
}

</mosaic_0001>

<bundles_post_ra>
// kernel: tpu_custom_call.1
= control target key start
LH: loop header
LB: loop body
LE: loop exit
PB: predicated region body
PF: predicated region fallthrough
CT: control target
= control target key end

     0   :  { %8 = vsyncpa [#allocation3], 0  ;;  %s289_s0 = inlined_call_operand.hbm [shape: f32[8,32], index: 0, kind: input, shape index: {}]   ;;  %s290_s1 = inlined_call_operand.hbm [shape: f32[8,32], index: 1, kind: input, shape index: {}]   ;;  %s291_s2 = inlined_call_operand.hbm [shape: f32[8,32], index: 2, kind: input, shape index: {}]   ;;  %s292_s3 = inlined_call_operand.hbm [shape: f32[1,1], index: 3, kind: output, shape index: {}]  }
   0x1   :  { %9 = vsyncpa [#allocation6], 0  ;;  %s27_s14 = sshll.u32 %s290_s1, 4  ;;  %s28_s14 = int_to_ptr.hbm [resolvable:$true] %s27_s14 }
   0x2   :  { %10 = vsyncpa [#allocation4], 0  ;;  %s253_s15 = smov [#allocation5]   ;;  %s16_s19 = sshll.u32 %s289_s0, 4  ;;  %s17_s19 = int_to_ptr.hbm [resolvable:$true] %s16_s19 }
   0x3   :  { %s29_s16 = sshll.u32 %s253_s15, 4  ;;  %s254_s20 = smov [#allocation2]   ;;  %s30_s16 = int_to_ptr.vmem [resolvable:$true] %s29_s16 }
   0x4   :  { %32 = dma.hbm_to_vmem [thread:$0]  %s28_s14, 128, %s30_s16, [#allocation6]  }
   0x5   :  { %s18_s21 = sshll.u32 %s254_s20, 4  ;;  %s38_s24 = sshll.u32 %s291_s2, 4  ;;  %s19_s21 = int_to_ptr.vmem [resolvable:$true] %s18_s21  ;;  %s39_s24 = int_to_ptr.hbm [resolvable:$true] %s38_s24 }
   0x6   :  { %21 = dma.hbm_to_vmem [thread:$0]  %s17_s19, 128, %s19_s21, [#allocation3]  }
   0x7   :  { %s255_s1 = smov [#allocation7]  }
   0x8   :  { %s40_s25 = sshll.u32 %s255_s1, 4  ;;  %s41_s25 = int_to_ptr.vmem [resolvable:$true] %s40_s25 }
   0x9   :  { %43 = dma.hbm_to_vmem [thread:$0]  %s39_s24, 128, %s41_s25, [#allocation6]  }
   0xa   :  { %247 = dma.done.wait [#allocation3], 128  }
   0xb   :  { %248 = vsyncadd [#allocation3], 4294967168 }
   0xc   :  { %249 = dma.done.wait [#allocation6], 256  }
   0xd   :  { %250 = vsyncadd [#allocation6], 4294967040  ;;  %v58_v0 = vld [vmem:[#allocation7] sm:$0xff]  ;;  %vm60_vm0 = vcmask 261120   ;;  %v56_v1 = vld [vmem:[#allocation2] sm:$0xff]  ;;  %vm121_vm10 = vcmask 7168  }
   0xe   :  { %v90_v2 = vmul.f32 %v58_v0, %v58_v0  ;;  %v59_v3 = vmul.f32 %v56_v1, %v56_v1  ;;  %v109_v4 = vmul.f32 %v58_v0, %v56_v1  ;;  %v57_v5 = vld [vmem:[#allocation5] sm:$0xff]  ;;  %s139_s26 = sshll.u32 %s292_s3, 4  ;;  %s256_s28 = smov [#allocation8]   ;;  %s140_s26 = int_to_ptr.hbm [resolvable:$true] %s139_s26 }
   0xf   :  { %v75_v9 = vmul.f32 %v57_v5, %v57_v5  ;;  %v105_v10 = vmul.f32 %v57_v5, %v56_v1 }
  0x10   :  { %v91_v6 = vsel %vm60_vm0, %v90_v2, 0.0  ;;  %v61_v7 = vsel %vm60_vm0, %v59_v3, 0.0  ;;  %v110_v8 = vsel %vm60_vm0, %v109_v4, 0.0 }
  0x11   :  { %92 = vadd.xlane.f32.xlu1 %v91_v6  ;;  %62 = vadd.xlane.f32.xlu0 %v61_v7  ;;  %v76_v11 = vsel %vm60_vm0, %v75_v9, 0.0  ;;  %v106_v12 = vsel %vm60_vm0, %v105_v10, 0.0 }
  0x12   :  { %111 = vadd.xlane.f32.xlu2 %v110_v8 }
  0x19   :  { %77 = vadd.xlane.f32.xlu0 %v76_v11  ;;  %107 = vadd.xlane.f32.xlu1 %v106_v12 }
  0x84   :  { %v93_v13 = vpop.xlane.xlu1 %92  ;;  %v63_v14 = vpop.xlane.xlu0 %62 }
  0x85   :  { %v94_v15 = vmax.f32 %v93_v13, 1e-16  ;;  %v64_v16 = vmax.f32 %v63_v14, 1e-16  ;;  %v112_v34 = vpop.xlane.xlu2 %111 }
  0x87   :  { %157 = vrsqrt.f32 %v94_v15  ;;  %vm71_vm2 = vweird.f32 %v64_v16  ;;  %vm101_vm4 = vweird.f32 %v94_v15 }
  0x88   :  { %159 = vrsqrt.f32 %v64_v16 }
  0x8c   :  { %v78_v17 = vpop.xlane.xlu0 %77  ;;  %v108_v38 = vpop.xlane.xlu1 %107 }
  0x8d   :  { %v158_v18 = vpop.eup %157  ;;  %v79_v19 = vmax.f32 %v78_v17, 1e-16 }
  0x8e   :  { %v160_v20 = vpop.eup %159  ;;  %v96_v21 = vmul.f32 %v158_v18, %v94_v15  ;;  %vm102_vm5 = vweird.f32 %v158_v18 }
  0x8f   :  { %v66_v22 = vmul.f32 %v160_v20, %v64_v16  ;;  %161 = vrsqrt.f32 %v79_v19  ;;  %vm72_vm1 = vweird.f32 %v160_v20  ;;  %vm86_vm7 = vweird.f32 %v79_v19  ;;  %vm103_vm8 = vmor %vm101_vm4, %vm102_vm5 }
  0x90   :  { %v97_v23 = vmul.f32 %v158_v18, %v96_v21  ;;  %vm73_vm3 = vmor %vm71_vm2, %vm72_vm1 }
  0x91   :  { %v67_v24 = vmul.f32 %v160_v20, %v66_v22 }
  0x92   :  { %v98_v26 = vmul.f32 0.5, %v97_v23 }
  0x93   :  { %v68_v25 = vmul.f32 0.5, %v67_v24 }
  0x94   :  { %v99_v31 = vsub.f32 1.5, %v98_v26 }
  0x95   :  { %v162_v27 = vpop.eup %161  ;;  %v69_v28 = vsub.f32 1.5, %v68_v25 }
  0x96   :  { %v81_v29 = vmul.f32 %v162_v27, %v79_v19  ;;  %vm87_vm6 = vweird.f32 %v162_v27  ;;  %v100_v37 = vmul.f32 %v158_v18, %v99_v31 }
  0x97   :  { %v70_v30 = vmul.f32 %v160_v20, %v69_v28  ;;  %vm88_vm9 = vmor %vm86_vm7, %vm87_vm6 }
  0x98   :  { %v82_v32 = vmul.f32 %v162_v27, %v81_v29  ;;  %v104_v42 = vsel %vm103_vm8, %v158_v18, %v100_v37 }
  0x99   :  { %v74_v35 = vsel %vm73_vm3, %v160_v20, %v70_v30 }
  0x9a   :  { %v83_v33 = vmul.f32 0.5, %v82_v32  ;;  %v115_v39 = vmul.f32 %v112_v34, %v74_v35  ;;  %v113_v41 = vmul.f32 %v108_v38, %v74_v35 }
  0x9c   :  { %v84_v36 = vsub.f32 1.5, %v83_v33  ;;  %v116_v44 = vmul.f32 %v115_v39, %v104_v42 }
  0x9e   :  { %v85_v40 = vmul.f32 %v162_v27, %v84_v36  ;;  %v119_v47 = vmul.f32 %v116_v44, %v116_v44 }
  0xa0   :  { %v89_v43 = vsel %vm88_vm9, %v162_v27, %v85_v40 }
  0xa1   :  { %v114_v45 = vmul.f32 %v113_v41, %v89_v43 }
  0xa3   :  { %v117_v46 = vsub.f32 1.0, %v114_v45 }
  0xa5   :  { %v118_v48 = vmul.f32 %v117_v46, %v117_v46 }
  0xa7   :  { %v120_v49 = vadd.f32 %v119_v47, %v118_v48 }
  0xa9   :  { %v122_v50 = vsel %vm121_vm10, %v120_v49, 0.0 }
  0xaa   :  { %123 = vadd.xlane.f32.xlu2 %v122_v50 }
 0x11d   :  { %v124_v51 = vpop.xlane.xlu2 %123 }
 0x11e   :  { %v125_v52 = vrot.slane %v124_v51, 4 }
 0x120   :  { %v126_v53 = vadd.f32 %v125_v52, %v124_v51 }
 0x122   :  { %v127_v54 = vrot.slane %v126_v53, 2 }
 0x124   :  { %v128_v55 = vadd.f32 %v127_v54, %v126_v53 }
 0x126   :  { %v129_v56 = vrot.slane %v128_v55, 1 }
 0x128   :  { %v130_v57 = vadd.f32 %v129_v56, %v128_v55 }
 0x12a   :  { %151 = vpush %v130_v57 }
 0x15b   :  { %s152_s27 = spop %151 }
 0x15c   :  { %133 = sst [smem:[#allocation8]] %s152_s27 }
 0x15d   :  { %142 = dma.smem_to_hbm %s256_s28, 16, %s140_s26, [#allocation4]  }
 0x15e   :  { %251 = dma.done.wait [#allocation4], 16  }
 0x15f   :  { %252 = vsyncadd [#allocation4], 4294967280 }
 0x160   :  { %147 = sfence }
 0x161   :  { %148 = vsyncpa [#allocation3], 1 }
 0x162   :  { %149 = vsyncpa [#allocation6], 1 }
 0x163   :  { %150 = vsyncpa [#allocation4], 1 }

</bundles_post_ra>
